<compile_context>
chip_gen: v5e
topology: v5e:2x2
jax: 0.10.0
libtpu: 0.0.40
codegen_flags: <defaults>
</compile_context>

<pallas_src>
import functools

import jax
import jax.numpy as jnp
from jax.experimental import pallas as pl
from jax.experimental.pallas import tpu as pltpu


_VMEM_SIZING_BUDGET = 16 * 1024 * 1024   # advisory working-set budget (safe on v7x)


def _round_up(n, m):
    return (n + m - 1) // m * m


def _cdiv(a, b):
    return (a + b - 1) // b


def _estimate_vmem(tm, d, hp, x_bytes, w_bytes):
    # Advisory only: omits Mosaic internal scratch / alignment padding.
    return (2 * tm * d * x_bytes            # double-buffered x tiles
            + 2 * tm * 4                    # double-buffered (tm, 1) out tiles
            + d * hp * w_bytes              # resident w1
            + hp * 4 + hp * 128 * 4         # resident b1 / w2
            + 3 * tm * hp * 4)              # f32 h + matmul / elementwise temps


def _prefers_mxu_fc2():
    # fc2-on-MXU frees the 2-unit XLU path (v6e/v7x); v5e (3 XLU units,
    # 128-wide MXU) keeps the VPU+XLU reduce.  Default to the MXU path if
    # hardware detection is unavailable.
    try:
        name = str(pltpu.get_tpu_info()).lower()
        return not any(tag in name for tag in ("v5e", "v5 lite", "v5_lite", "v5lite"))
    except Exception:
        return True


def _mine_kernel(x_ref, w1_ref, b1_ref, w2_ref, b2_ref, o_ref, *, fc2_on_mxu):
    # fc1 on the MXU: (TM, D) @ (D, Hp), f32 accumulation.
    h = jnp.dot(x_ref[...], w1_ref[...], preferred_element_type=jnp.float32)
    # bias + ReLU on the VPU.  NOTE: hidden columns H..Hp-1 are zero-padded in
    # BOTH w1 and b1, so relu(0 + 0) = 0 there and they contribute nothing.
    h = jnp.maximum(h + b1_ref[...], 0.0)
    if fc2_on_mxu:
        # fc2 on the MXU: w2 sits in column 0 of an (Hp, 128) matrix (rest
        # zeros); keeps the 2-unit XLU lane-reduce path free (v6e / v7x).
        out = jnp.dot(h, w2_ref[...], preferred_element_type=jnp.float32)[:, 0:1]
    else:
        # fc2 as VPU multiply + XLU cross-lane reduction (preferred on v5e).
        out = jnp.sum(h * w2_ref[...], axis=-1, keepdims=True)   # (TM, 1)
    # +b2 scalar comes from SMEM, folded into the final store.
    o_ref[...] = out + b2_ref[0, 0]


def mine_forward(x, w1, b1, w2, b2, *, block_m=4096, fc2_on_mxu=None):
    """Forward pass of MINE: relu(x @ w1 + b1) @ w2 + b2.

    x : (B, D)   float32 or bfloat16
    w1: (D, H)   float32 or bfloat16   (PyTorch fc1.weight, transposed)
    b1: (1, H)   float32
    w2: (H, 1)   float32               (PyTorch fc2.weight, transposed)
    b2: (1, 1)   float32
    returns (B, 1) float32
    """
    if fc2_on_mxu is None:
        fc2_on_mxu = _prefers_mxu_fc2()

    B, D = x.shape
    H = w1.shape[1]
    Hp = _round_up(H, 128)

    # Zero-pad hidden 100 -> 128 (lane-aligned).  The padding is only inert
    # because b1 and w2 are zero-padded too -- keep the pads zero.
    if Hp != H:
        w1 = jnp.pad(w1, ((0, 0), (0, Hp - H)))
        b1 = jnp.pad(b1, ((0, 0), (0, Hp - H)))
        w2p = jnp.pad(w2.astype(jnp.float32), ((0, Hp - H), (0, 0)))   # (Hp, 1)
    else:
        w2p = w2.astype(jnp.float32)
    b1 = b1.astype(jnp.float32)
    b2 = jnp.reshape(b2, (1, 1)).astype(jnp.float32)

    if fc2_on_mxu:
        w2_op = jnp.pad(w2p, ((0, 0), (0, 127)))           # (Hp, 128), col 0 = w2
        w2_spec = pl.BlockSpec((Hp, 128), lambda i: (0, 0))
    else:
        w2_op = jnp.reshape(w2p, (1, Hp))                  # (1, Hp) row
        w2_spec = pl.BlockSpec((1, Hp), lambda i: (0, 0))

    # Batch tile: as large as possible (amortizes per-grid-step cost, big DMAs),
    # multiple of 8 sublanes, capped so the grid keeps >= 4 steps, and shrunk
    # (advisory) if the estimated working set would exceed the VMEM budget.
    tm = max(8, _round_up(min(block_m, _round_up(B, 8)), 8))
    tm = min(tm, max(8, _round_up(_cdiv(B, 4), 8)))
    while tm > 8 and _estimate_vmem(tm, D, Hp, x.dtype.itemsize,
                                    w1.dtype.itemsize) > _VMEM_SIZING_BUDGET:
        tm = max(8, _round_up(tm // 2, 8))

    # No wrapper-side padding of x: the ragged last block reads OOB rows as pad
    # and its OOB output rows are masked on writeback.
    grid = (_cdiv(B, tm),)

    kernel = functools.partial(_mine_kernel, fc2_on_mxu=fc2_on_mxu)
    out = pl.pallas_call(
        kernel,
        out_shape=jax.ShapeDtypeStruct((B, 1), jnp.float32),
        grid=grid,
        in_specs=[
            pl.BlockSpec((tm, D), lambda i: (i, 0)),            # streamed x tiles
            pl.BlockSpec((D, Hp), lambda i: (0, 0)),            # resident w1
            pl.BlockSpec((1, Hp), lambda i: (0, 0)),            # resident b1
            w2_spec,                                            # resident w2
            pl.BlockSpec(memory_space=pltpu.MemorySpace.SMEM),  # b2 scalar in SMEM
        ],
        out_specs=pl.BlockSpec((tm, 1), lambda i: (i, 0)),
        compiler_params=pltpu.CompilerParams(
            dimension_semantics=("parallel",),      # batch steps across TCs (v7x)
        ),
    )(x, w1, b1, w2_op, b2)

    return out


def init_params(key, input_size, hidden=100):
    """Deterministic init mimicking PyTorch nn.Linear default (U(+/- 1/sqrt(fan_in))).

    Weights are stored pre-transposed relative to PyTorch's (out, in) layout."""
    k1, k2, k3, k4 = jax.random.split(key, 4)
    bound1 = 1.0 / jnp.sqrt(jnp.float32(input_size))
    bound2 = 1.0 / jnp.sqrt(jnp.float32(hidden))
    w1 = jax.random.uniform(k1, (input_size, hidden), jnp.float32, -bound1, bound1)
    b1 = jax.random.uniform(k2, (1, hidden), jnp.float32, -bound1, bound1)
    w2 = jax.random.uniform(k3, (hidden, 1), jnp.float32, -bound2, bound2)
    b2 = jax.random.uniform(k4, (1, 1), jnp.float32, -bound2, bound2)
    return w1, b1, w2, b2


if __name__ == "__main__":
    key = jax.random.PRNGKey(0)
    kx, kp = jax.random.split(key)

    # B=1000 is deliberately NOT a multiple of the batch tile: exercises the
    # pad-free ragged last block and a multi-step (>=4) grid.
    B, D, H = 1000, 32, 100
    x = jax.random.normal(kx, (B, D), jnp.float32)
    w1, b1, w2, b2 = init_params(kp, D, H)

    # Stream the big operands (x, w1) as bf16 to halve HBM traffic; the kernel
    # accumulates in f32.  Pass f32 operands if exact f32 streaming is needed.
    x_bf16 = x.astype(jnp.bfloat16)
    w1_bf16 = w1.astype(jnp.bfloat16)

    out = mine_forward(x_bf16, w1_bf16, b1, w2, b2)
    out = jax.block_until_ready(out)

    # Reference with identical operand precision (same bf16 values upcast to
    # f32, math in f32); fc2 reference done as an exact elementwise f32 reduce.
    xr = x_bf16.astype(jnp.float32)
    w1r = w1_bf16.astype(jnp.float32)
    h_ref = jnp.maximum(
        jnp.dot(xr, w1r, precision=jax.lax.Precision.HIGHEST) + b1, 0.0)
    ref = jnp.sum(h_ref * jnp.reshape(w2, (1, H)), axis=-1, keepdims=True) + b2

    assert out.shape == (B, 1)
    assert out.dtype == jnp.float32
    # Tolerance covers bf16 operand streaming plus possible reduced-precision
    # MXU passes on the f32 fc2 matmul; structural errors would be >> 1e-2.
    assert jnp.allclose(out, ref, atol=5e-3, rtol=5e-3), float(
        jnp.max(jnp.abs(out - ref)))

    print("KERNEL_OK")
</pallas_src>

<mosaic_0001>
module attributes {stable_mosaic.version = 11 : i64} {
  func.func @_mine_kernel(%arg0: i32, %arg1: memref<256x32xbf16, #tpu.memory_space<vmem>>, %arg2: memref<32x128xbf16, #tpu.memory_space<vmem>>, %arg3: memref<1x128xf32, #tpu.memory_space<vmem>>, %arg4: memref<128x128xf32, #tpu.memory_space<vmem>>, %arg5: memref<1x1xf32, #tpu.memory_space<smem>>, %arg6: memref<256x1xf32, #tpu.memory_space<vmem>>) attributes {dimension_semantics = [#tpu.dimension_semantics<parallel>], iteration_bounds = array<i64: 4>, scalar_prefetch = 0 : i64, scratch_operands = 0 : i64, tpu.core_type = #tpu.core_type<tc>, window_params = [{transform_indices = @transform_0, window_bounds = array<i64: 256, 32>}, {pipeline_mode = #tpu.pipeline_mode<synchronous>, transform_indices = @transform_1, window_bounds = array<i64: 32, 128>}, {pipeline_mode = #tpu.pipeline_mode<synchronous>, transform_indices = @transform_2, window_bounds = array<i64: 1, 128>}, {pipeline_mode = #tpu.pipeline_mode<synchronous>, transform_indices = @transform_3, window_bounds = array<i64: 128, 128>}, {transform_indices = @transform_4, window_bounds = array<i64: 1, 1>}, {transform_indices = @transform_5, window_bounds = array<i64: 256, 1>}]} {
    %c0 = arith.constant 0 : index
    %c0_0 = arith.constant 0 : index
    %0 = vector.load %arg1[%c0, %c0_0] : memref<256x32xbf16, #tpu.memory_space<vmem>>, vector<256x32xbf16>
    %c0_1 = arith.constant 0 : index
    %c0_2 = arith.constant 0 : index
    %1 = vector.load %arg2[%c0_1, %c0_2] : memref<32x128xbf16, #tpu.memory_space<vmem>>, vector<32x128xbf16>
    %cst = arith.constant dense<0.000000e+00> : vector<256x128xf32>
    %2 = tpu.matmul %0, %1, %cst {dimension_numbers = #tpu.dot_dimension_numbers<[1], [0], [0], [1], [0, 0, 1, 1], [], []>} : vector<256x32xbf16>, vector<32x128xbf16>, vector<256x128xf32> -> vector<256x128xf32>
    %c0_3 = arith.constant 0 : index
    %c0_4 = arith.constant 0 : index
    %3 = vector.load %arg3[%c0_3, %c0_4] : memref<1x128xf32, #tpu.memory_space<vmem>>, vector<1x128xf32>
    %4 = vector.broadcast %3 : vector<1x128xf32> to vector<256x128xf32>
    %5 = arith.addf %2, %4 : vector<256x128xf32>
    %cst_5 = arith.constant 0.000000e+00 : f32
    %6 = vector.broadcast %cst_5 : f32 to vector<256x128xf32>
    %7 = arith.maximumf %5, %6 : vector<256x128xf32>
    %c0_6 = arith.constant 0 : index
    %c0_7 = arith.constant 0 : index
    %8 = vector.load %arg4[%c0_6, %c0_7] : memref<128x128xf32, #tpu.memory_space<vmem>>, vector<128x128xf32>
    %cst_8 = arith.constant dense<0.000000e+00> : vector<256x128xf32>
    %9 = tpu.matmul %7, %8, %cst_8 {dimension_numbers = #tpu.dot_dimension_numbers<[1], [0], [0], [1], [0, 0, 1, 1], [], []>} : vector<256x128xf32>, vector<128x128xf32>, vector<256x128xf32> -> vector<256x128xf32>
    %10 = vector.extract_strided_slice %9 {offsets = [0, 0], sizes = [256, 1], strides = [1, 1]} : vector<256x128xf32> to vector<256x1xf32>
    %c0_9 = arith.constant 0 : index
    %c0_10 = arith.constant 0 : index
    %11 = memref.load %arg5[%c0_9, %c0_10] : memref<1x1xf32, #tpu.memory_space<smem>>
    %12 = vector.broadcast %11 : f32 to vector<256x1xf32>
    %13 = arith.addf %10, %12 : vector<256x1xf32>
    %c0_11 = arith.constant 0 : index
    %c0_12 = arith.constant 0 : index
    %14 = vector.load %arg6[%c0_11, %c0_12] : memref<256x1xf32, #tpu.memory_space<vmem>>, vector<256x1xf32>
    tpu.vector_store %arg6[%c0_11, %c0_12], %13 {strides = array<i32>} : memref<256x1xf32, #tpu.memory_space<vmem>>, vector<256x1xf32>,
    return
  }
  func.func @transform_0(%arg0: i32) -> (i32, i32) {
    %c0_i32 = arith.constant 0 : i32
    %c0_i32_0 = arith.constant 0 : i32
    return %arg0, %c0_i32 : i32, i32
  }
  func.func @transform_1(%arg0: i32) -> (i32, i32) {
    %c0_i32 = arith.constant 0 : i32
    %c0_i32_0 = arith.constant 0 : i32
    %c0_i32_1 = arith.constant 0 : i32
    return %c0_i32, %c0_i32_0 : i32, i32
  }
  func.func @transform_2(%arg0: i32) -> (i32, i32) {
    %c0_i32 = arith.constant 0 : i32
    %c0_i32_0 = arith.constant 0 : i32
    %c0_i32_1 = arith.constant 0 : i32
    return %c0_i32, %c0_i32_0 : i32, i32
  }
  func.func @transform_3(%arg0: i32) -> (i32, i32) {
    %c0_i32 = arith.constant 0 : i32
    %c0_i32_0 = arith.constant 0 : i32
    %c0_i32_1 = arith.constant 0 : i32
    return %c0_i32, %c0_i32_0 : i32, i32
  }
  func.func @transform_4(%arg0: i32) -> (i32, i32) {
    %c0_i32 = arith.constant 0 : i32
    %c0_i32_0 = arith.constant 0 : i32
    %c0_i32_1 = arith.constant 0 : i32
    return %c0_i32, %c0_i32_0 : i32, i32
  }
  func.func @transform_5(%arg0: i32) -> (i32, i32) {
    %c0_i32 = arith.constant 0 : i32
    %c0_i32_0 = arith.constant 0 : i32
    return %arg0, %c0_i32 : i32, i32
  }
}

</mosaic_0001>

<bundles_post_ra>
// kernel: tpu_custom_call.1
= control target key start
LH: loop header
LB: loop body
LE: loop exit
PB: predicated region body
PF: predicated region fallthrough
CT: control target
= control target key end

     0   :  { %s1868_s0 = inlined_call_operand.vmem [shape: bf16[1000,32], index: 0, kind: input, shape index: {}]   ;;  %s1869_s1 = inlined_call_operand.vmem [shape: bf16[32,128], index: 1, kind: input, shape index: {}]   ;;  %s1870_s2 = inlined_call_operand.vmem [shape: f32[1,128], index: 2, kind: input, shape index: {}]   ;;  %s1871_s3 = inlined_call_operand.vmem [shape: f32[128,128], index: 3, kind: input, shape index: {}]   ;;  %s1872_s4 = inlined_call_operand.<no memory space> [shape: f32[1,1], index: 4, kind: input, shape index: {}]   ;;  %s1873_s5 = inlined_call_operand.vmem [shape: f32[1000,1], index: 5, kind: output, shape index: {}]  }
   0x1   :  { %10 = sst [smem:[#allocation2]] %s1872_s4 }
   0x2   :  { %s1463_s20 = smov 0   ;;  %s1465_s21 = smov 0  }
   0x3   :  { %s1467_s22 = smov 0  }
   0x4 LB: > { %s1476_s4 = sadd.s32 4294967295, %s1396_s22   ;;  %s1478_s23 = sadd.s32 1, %s1396_s22   ;;  %s1396_s22 = sphi %s1467_s22, %s1882_s22   ;;  %s1392_s21 = sphi %s1465_s21, %s1881_s21   ;;  %s1388_s20 = sphi %s1463_s20, %s1880_s20  }
   0x5   : > { %s130_s24 = ssub.s32 %s1396_s22, %s1478_s23  ;;  %s133_s25 = sadd.s32 1, %s1392_s21 }
   0x6   : > { %p131_p0 = scmp.eq.s32.totalorder %s130_s24, 0  ;;  %p143_p1 = scmp.ne.s32.totalorder %s1392_s21, %s1388_s20 }
   0x7   : > { %p144_p2 = scmp.eq.s32.totalorder %s1476_s4, 3  ;;  %p1089_p3 = scmp.ge.s32.totalorder %s1396_s22, 1 }
   0x8   : > { %s1486_s26 = scalar_select %p131_p0, %s1392_s21, %s133_s25  }
   0x9   : > { %p1488_p4 = por %p144_p2, %p143_p1  ;;  %p197_p5 = scmp.lt.s32.totalorder %s1396_s22, 5 }
   0xb   : > { %p198_p6 = pnand %p1089_p3, %p197_p5 }
   0xc   : > { %s1496_s30 = sshll.u32 (!%p198_p6), %s1476_s4, 5  ;;  %s225_s10 = sand.u32 (!%p198_p6), 1, %s1388_s20  }
   0xd   : > { %201 = sbr.rel (%p198_p6) target bundleno = 587 (0x24b), region = 40  ;;  %p233_p7 = scmp.lt.s32.totalorder (!%p198_p6), %s1496_s30, 124 }
   0xe   : > { %s1090_s11 = sshll.u32 (!%p198_p6), %s225_s10, 8 }
   0xf   : > { %s1614_s13 = scalar_lea.vmem (!%p198_p6), [#allocation3], %s1090_s11  }
  0x12   : > { %v1215_v0 = vld [vmem:[%s1869_s1 + $0x8] sm:$0xff]  ;;  %v1214_v1 = vld [vmem:[%s1869_s1] sm:$0xff]  ;;  %s234_s8 = scalar_select %p233_p7, %s1496_s30, 124  ;;  %vm380_vm0 = vcmask 261120   ;;  %v565_v7 = vld [vmem:[%s1871_s3 + $0x78] sm:$0xff]  ;;  %vm713_vm1 = vcmask 7168  }
  0x13   : > { %435 = vmatpush.bf16.msra.mxu0 %v1215_v0  ;;  %1219 = vmatpush.bf16.msra.mxu3 %v1215_v0  ;;  %v564_v8 = vld [vmem:[%s1871_s3 + $0x70] sm:$0xff]  ;;  %v563_v9 = vld [vmem:[%s1871_s3 + $0x68] sm:$0xff]  ;;  %v562_v10 = vld [vmem:[%s1871_s3 + $0x60] sm:$0xff]  ;;  %s754_s20 = ssub.s32 (%p1488_p4), 125, %s1496_s30  ;;  %s1216_s14 = sshll.u32 (%p1488_p4), %s1476_s4, 8 }
  0x14   : > { %s1092_s9 = sshll.u32 %s234_s8, 2  ;;  %566 = vmatpush.msra.mxu1 %v565_v7  ;;  %1221 = vmatpush.msra.mxu2 %v565_v7  ;;  %v561_v11 = vld [vmem:[%s1871_s3 + $0x58] sm:$0xff]  ;;  %v560_v12 = vld [vmem:[%s1871_s3 + $0x50] sm:$0xff]  ;;  %v559_v13 = vld [vmem:[%s1871_s3 + $0x48] sm:$0xff]  ;;  %p755_p8 = scmp.lt.s32.totalorder (%p1488_p4), %s754_s20, 32 }
  0x15   : > { %s1506_s12 = scalar_lea.vmem %s1868_s0, %s1092_s9  ;;  %v558_v15 = vld [vmem:[%s1871_s3 + $0x40] sm:$0xff]  ;;  %v557_v17 = vld [vmem:[%s1871_s3 + $0x38] sm:$0xff]  ;;  %v556_v18 = vld [vmem:[%s1871_s3 + $0x30] sm:$0xff]  ;;  %s1733_s17 = scalar_lea.vmem (%p1488_p4), %s1873_s5, %s1216_s14  }
  0x16   : > { %v1198_v2 = vld [vmem:[%s1506_s12] sm:$0xff]  ;;  %v1199_v3 = vld [vmem:[%s1506_s12 + $0x8] sm:$0xff]  ;;  %v1200_v4 = vld [vmem:[%s1506_s12 + $0x10] sm:$0xff]  ;;  %567 = vmatpush.msra.mxu1 %v564_v8  ;;  %1223 = vmatpush.msra.mxu2 %v564_v8 }
  0x17   : > { %436 = vmatpush.bf16.msra.mxu0 %v1214_v1  ;;  %1220 = vmatpush.bf16.msra.mxu3 %v1214_v1  ;;  %v1201_v5 = vld [vmem:[%s1506_s12 + $0x18] sm:$0xff]  ;;  %v1202_v6 = vld [vmem:[%s1506_s12 + $0x20] sm:$0xff]  ;;  %v1203_v14 = vld [vmem:[%s1506_s12 + $0x28] sm:$0xff] }
  0x18   : > { %568 = vmatpush.msra.mxu1 %v563_v9  ;;  %1225 = vmatpush.msra.mxu2 %v563_v9  ;;  %v1207_v16 = vld [vmem:[%s1506_s12 + $0x48] sm:$0xff]  ;;  %v554_v20 = vld [vmem:[%s1871_s3 + $0x20] sm:$0xff]  ;;  %v553_v21 = vld [vmem:[%s1871_s3 + $0x18] sm:$0xff] }
  0x19   : > { %v555_v19 = vld [vmem:[%s1871_s3 + $0x28] sm:$0xff]  ;;  %v1204_v22 = vld [vmem:[%s1506_s12 + $0x30] sm:$0xff]  ;;  %v550_v25 = vld [vmem:[%s1871_s3] sm:$0xff] }
  0x1a   : > { %1165 = vmatmul.msk.bf16.vlgmr.msra.gmra.mxu0 %vm380_vm0, %v1198_v2  ;;  %569 = vmatpush.msra.mxu1 %v562_v10  ;;  %v552_v23 = vld [vmem:[%s1871_s3 + $0x10] sm:$0xff]  ;;  %v551_v24 = vld [vmem:[%s1871_s3 + $0x8] sm:$0xff]  ;;  %v1205_v27 = vld [vmem:[%s1506_s12 + $0x38] sm:$0xff] }
  0x1b   : > { %1222 = vmatpush.msrb.mxu3 %v565_v7  ;;  %1227 = vmatpush.msra.mxu2 %v562_v10  ;;  %v1208_v26 = vld [vmem:[%s1506_s12 + $0x50] sm:$0xff]  ;;  %v1209_v28 = vld [vmem:[%s1506_s12 + $0x58] sm:$0xff]  ;;  %v1581_v29 = vld [vmem:[%s1870_s2] ss:$0 sm:$0xff] }
  0x1c   : > { %570 = vmatpush.msra.mxu1 %v561_v11  ;;  %1174 = vmatmul.msk.bf16.vlgmr.msra.gmra.mxu3 %vm380_vm0, %v1207_v16  ;;  %v1206_v30 = vld [vmem:[%s1506_s12 + $0x40] sm:$0xff]  ;;  %v1211_v41 = vld [vmem:[%s1506_s12 + $0x68] sm:$0xff]  ;;  %v1212_v48 = vld [vmem:[%s1506_s12 + $0x70] sm:$0xff] }
  0x1d   : > { %1224 = vmatpush.msrb.mxu3 %v564_v8  ;;  %1229 = vmatpush.msra.mxu2 %v561_v11  ;;  %v1210_v34 = vld [vmem:[%s1506_s12 + $0x60] sm:$0xff]  ;;  %v1213_v55 = vld [vmem:[%s1506_s12 + $0x78] sm:$0xff]  ;;  %s679_s12 = sld [smem:[#allocation2]] }
  0x1e   : > { %571 = vmatpush.msra.mxu1 %v560_v12 }
  0x1f   : > { %1226 = vmatpush.msrb.mxu3 %v563_v9  ;;  %1231 = vmatpush.msra.mxu2 %v560_v12 }
  0x20   : > { %572 = vmatpush.msra.mxu1 %v559_v13 }
  0x21   : > { %1228 = vmatpush.msrb.mxu3 %v562_v10  ;;  %1233 = vmatpush.msra.mxu2 %v559_v13 }
  0x22   : > { %573 = vmatpush.msra.mxu1 %v558_v15 }
  0x23   : > { %1230 = vmatpush.msrb.mxu3 %v561_v11  ;;  %1235 = vmatpush.msra.mxu2 %v558_v15 }
  0x24   : > { %574 = vmatpush.msra.mxu1 %v557_v17 }
  0x25   : > { %1232 = vmatpush.msrb.mxu3 %v560_v12  ;;  %1237 = vmatpush.msra.mxu2 %v557_v17 }
  0x26   : > { %575 = vmatpush.msra.mxu1 %v556_v18 }
  0x27   : > { %1234 = vmatpush.msrb.mxu3 %v559_v13  ;;  %1239 = vmatpush.msra.mxu2 %v556_v18 }
  0x28   : > { %576 = vmatpush.msra.mxu1 %v555_v19 }
  0x29   : > { %1236 = vmatpush.msrb.mxu3 %v558_v15  ;;  %1241 = vmatpush.msra.mxu2 %v555_v19 }
  0x2a   : > { %1166 = vmatmul.msk.bf16.gmra.mxu0 %vm380_vm0, %v1199_v3  ;;  %577 = vmatpush.msra.mxu1 %v554_v20 }
  0x2b   : > { %1238 = vmatpush.msrb.mxu3 %v557_v17  ;;  %1243 = vmatpush.msra.mxu2 %v554_v20 }
  0x2c   : > { %578 = vmatpush.msra.mxu1 %v553_v21  ;;  %1175 = vmatmul.msk.bf16.gmra.mxu3 %vm380_vm0, %v1208_v26 }
  0x2d   : > { %1240 = vmatpush.msrb.mxu3 %v556_v18  ;;  %1245 = vmatpush.msra.mxu2 %v553_v21 }
  0x2e   : > { %579 = vmatpush.msra.mxu1 %v552_v23 }
  0x2f   : > { %1242 = vmatpush.msrb.mxu3 %v555_v19  ;;  %1247 = vmatpush.msra.mxu2 %v552_v23 }
  0x30   : > { %580 = vmatpush.msra.mxu1 %v551_v24 }
  0x31   : > { %1244 = vmatpush.msrb.mxu3 %v554_v20  ;;  %1249 = vmatpush.msra.mxu2 %v551_v24 }
  0x32   : > { %581 = vmatpush.msra.mxu1 %v550_v25 }
  0x33   : > { %1246 = vmatpush.msrb.mxu3 %v553_v21  ;;  %1251 = vmatpush.msra.mxu2 %v550_v25 }
  0x35   : > { %1248 = vmatpush.msrb.mxu3 %v552_v23 }
  0x37   : > { %1250 = vmatpush.msrb.mxu3 %v551_v24 }
  0x39   : > { %1252 = vmatpush.msrb.mxu3 %v550_v25  ;;  %v1610_v25 = vstv %s679_s12 }
  0x3a   : > { %1167 = vmatmul.msk.bf16.gmra.mxu0 %vm380_vm0, %v1200_v4 }
  0x3c   : > { %1176 = vmatmul.msk.bf16.gmra.mxu3 %vm380_vm0, %v1209_v28 }
  0x4a   : > { %1168 = vmatmul.msk.bf16.gmra.mxu0 %vm380_vm0, %v1201_v5 }
  0x4c   : > { %1177 = vmatmul.msk.bf16.gmra.mxu3 %vm380_vm0, %v1210_v34 }
  0x5a   : > { %1169 = vmatmul.msk.bf16.gmra.mxu0 %vm380_vm0, %v1202_v6 }
  0x5c   : > { %1178 = vmatmul.msk.bf16.gmra.mxu3 %vm380_vm0, %v1211_v41 }
  0x6a   : > { %1170 = vmatmul.msk.bf16.gmra.mxu0 %vm380_vm0, %v1203_v14 }
  0x6c   : > { %1179 = vmatmul.msk.bf16.gmra.mxu3 %vm380_vm0, %v1212_v48 }
  0x7a   : > { %1171 = vmatmul.msk.bf16.gmra.mxu0 %vm380_vm0, %v1204_v22 }
  0x7c   : > { %1180 = vmatmul.msk.bf16.gmra.mxu3 %vm380_vm0, %v1213_v55 }
  0x8a   : > { %1172 = vmatmul.msk.bf16.gmra.mxu0 %vm380_vm0, %v1205_v27 }
  0x97   : > { %v438_v31 = vpop.f32.mrf.mxu0 }
  0x98   : > { %v439_v32 = vadd.f32 %v1581_v29, %v438_v31 }
  0x9a   : > { %v518_v33 = vmax.f32 %v439_v32, 0.0  ;;  %1173 = vmatmul.msk.bf16.gmra.mxu0 %vm380_vm0, %v1206_v30 }
  0x9c   : > { %582 = vmatmul.f32.vlgmr.msra.gmra.mxu1 %v518_v33 }
  0x9f   : > { %v440_v35 = vpop.f32.mrf.mxu0  ;;  %v483_v5 = vpop.f32.mrf.mxu3 }
  0xa0   : > { %v441_v36 = vadd.f32 %v1581_v29, %v440_v35 }
  0xa2   : > { %v519_v37 = vmax.f32 %v441_v36, 0.0 }
  0xa4   : > { %585 = vmatmul.f32.gmra.mxu1 %v519_v37 }
  0xa7   : > { %v443_v38 = vpop.f32.mrf.mxu0  ;;  %v485_v9 = vpop.f32.mrf.mxu3 }
  0xa8   : > { %v444_v39 = vadd.f32 %v1581_v29, %v443_v38  ;;  %v484_v38 = vadd.f32 %v1581_v29, %v483_v5 }
  0xaa   : > { %v520_v40 = vmax.f32 %v444_v39, 0.0  ;;  %v536_v41 = vmax.f32 %v484_v38, 0.0 }
  0xac   : > { %588 = vmatmul.f32.gmra.mxu1 %v520_v40 }
  0xaf   : > { %v445_v42 = vpop.f32.mrf.mxu0  ;;  %v488_v13 = vpop.f32.mrf.mxu3 }
  0xb0   : > { %v446_v43 = vadd.f32 %v1581_v29, %v445_v42  ;;  %v489_v48 = vadd.f32 %v1581_v29, %v488_v13 }
  0xb2   : > { %v521_v44 = vmax.f32 %v446_v43, 0.0  ;;  %v486_v43 = vadd.f32 %v1581_v29, %v485_v9 }
  0xb4   : > { %591 = vmatmul.f32.gmra.mxu1 %v521_v44 }
  0xb7   : > { %v448_v45 = vpop.f32.mrf.mxu0  ;;  %v490_v17 = vpop.f32.mrf.mxu3 }
  0xb8   : > { %v449_v46 = vadd.f32 %v1581_v29, %v448_v45 }
  0xba   : > { %v522_v47 = vmax.f32 %v449_v46, 0.0  ;;  %v537_v46 = vmax.f32 %v486_v43, 0.0 }
  0xbc   : > { %594 = vmatmul.f32.gmra.mxu1 %v522_v47 }
  0xbf   : > { %v450_v49 = vpop.f32.mrf.mxu0  ;;  %v493_v21 = vpop.f32.mrf.mxu3 }
  0xc0   : > { %v451_v50 = vadd.f32 %v1581_v29, %v450_v49 }
  0xc2   : > { %v523_v51 = vmax.f32 %v451_v50, 0.0 }
  0xc4   : > { %597 = vmatmul.f32.gmra.mxu1 %v523_v51  ;;  %v538_v51 = vmax.f32 %v489_v48, 0.0 }
  0xc7   : > { %v453_v52 = vpop.f32.mrf.mxu0  ;;  %v495_v26 = vpop.f32.mrf.mxu3 }
  0xc8   : > { %v454_v53 = vadd.f32 %v1581_v29, %v453_v52 }
  0xca   : > { %v524_v54 = vmax.f32 %v454_v53, 0.0  ;;  %v491_v53 = vadd.f32 %v1581_v29, %v490_v17 }
  0xcc   : > { %600 = vmatmul.f32.gmra.mxu1 %v524_v54 }
  0xcf   : > { %v455_v56 = vpop.f32.mrf.mxu0  ;;  %v498_v33 = vpop.f32.mrf.mxu3 }
  0xd0   : > { %v456_v57 = vadd.f32 %v1581_v29, %v455_v56  ;;  %v539_v56 = vmax.f32 %v491_v53, 0.0 }
  0xd2   : > { %v525_v58 = vmax.f32 %v456_v57, 0.0 }
  0xd4   : > { %603 = vmatmul.f32.gmra.mxu1 %v525_v58  ;;  %v494_v58 = vadd.f32 %v1581_v29, %v493_v21 }
  0xd7   : > { %v458_v59 = vpop.f32.mrf.mxu0  ;;  %v500_v39 = vpop.f32.mrf.mxu3 }
  0xd8   : > { %v459_v60 = vadd.f32 %v1581_v29, %v458_v59  ;;  %v501_v13 = vadd.f32 %v1581_v29, %v500_v39 }
  0xda   : > { %v526_v61 = vmax.f32 %v459_v60, 0.0 }
  0xdc   : > { %606 = vmatmul.f32.gmra.mxu1 %v526_v61  ;;  %v540_v61 = vmax.f32 %v494_v58, 0.0 }
  0xdf   : > { %v460_v62 = vpop.f32.mrf.mxu0  ;;  %v503_v44 = vpop.f32.mrf.mxu3 }
  0xe0   : > { %v461_v63 = vadd.f32 %v1581_v29, %v460_v62  ;;  %v504_v17 = vadd.f32 %v1581_v29, %v503_v44 }
  0xe2   : > { %v527_v0 = vmax.f32 %v461_v63, 0.0  ;;  %v496_v63 = vadd.f32 %v1581_v29, %v495_v26 }
  0xe4   : > { %609 = vmatmul.f32.gmra.mxu1 %v527_v0 }
  0xe7   : > { %v463_v1 = vpop.f32.mrf.mxu0  ;;  %v505_v49 = vpop.f32.mrf.mxu3 }
  0xe8   : > { %v464_v2 = vadd.f32 %v1581_v29, %v463_v1  ;;  %v506_v21 = vadd.f32 %v1581_v29, %v505_v49 }
  0xea   : > { %v528_v3 = vmax.f32 %v464_v2, 0.0 }
  0xec   : > { %612 = vmatmul.f32.gmra.mxu1 %v528_v3  ;;  %v541_v3 = vmax.f32 %v496_v63, 0.0 }
  0xef   : > { %v465_v4 = vpop.f32.mrf.mxu0  ;;  %v508_v54 = vpop.f32.mrf.mxu3 }
  0xf0   : > { %v466_v6 = vadd.f32 %v1581_v29, %v465_v4  ;;  %v509_v26 = vadd.f32 %v1581_v29, %v508_v54 }
  0xf2   : > { %v529_v7 = vmax.f32 %v466_v6, 0.0  ;;  %v499_v6 = vadd.f32 %v1581_v29, %v498_v33 }
  0xf4   : > { %615 = vmatmul.f32.gmra.mxu1 %v529_v7 }
  0xf7   : > { %v468_v8 = vpop.f32.mrf.mxu0  ;;  %v510_v59 = vpop.f32.mrf.mxu3 }
  0xf8   : > { %v469_v10 = vadd.f32 %v1581_v29, %v468_v8 }
  0xfa   : > { %v530_v11 = vmax.f32 %v469_v10, 0.0  ;;  %v542_v10 = vmax.f32 %v499_v6, 0.0 }
  0xfc   : > { %618 = vmatmul.f32.gmra.mxu1 %v530_v11 }
  0xff   : > { %v470_v12 = vpop.f32.mrf.mxu0  ;;  %v513_v0 = vpop.f32.mrf.mxu3 }
 0x100   : > { %v471_v14 = vadd.f32 %v1581_v29, %v470_v12  ;;  %v514_v1 = vadd.f32 %v1581_v29, %v513_v0 }
 0x102   : > { %v531_v15 = vmax.f32 %v471_v14, 0.0  ;;  %v548_v5 = vmax.f32 %v514_v1, 0.0 }
 0x104   : > { %621 = vmatmul.f32.gmra.mxu1 %v531_v15  ;;  %672 = vmatmul.f32.vlgmr.msrb.gmra.mxu3 %v548_v5  ;;  %v543_v15 = vmax.f32 %v501_v13, 0.0 }
 0x107   : > { %v473_v16 = vpop.f32.mrf.mxu0  ;;  %v515_v7 = vpop.f32.mrf.mxu3 }
 0x108   : > { %v474_v18 = vadd.f32 %v1581_v29, %v473_v16  ;;  %v516_v8 = vadd.f32 %v1581_v29, %v515_v7 }
 0x10a   : > { %v532_v19 = vmax.f32 %v474_v18, 0.0  ;;  %v549_v12 = vmax.f32 %v516_v8, 0.0 }
 0x10c   : > { %624 = vmatmul.f32.gmra.mxu1 %v532_v19  ;;  %675 = vmatmul.f32.gmra.mxu3 %v549_v12  ;;  %v544_v19 = vmax.f32 %v504_v17, 0.0 }
 0x10f   : > { %v475_v20 = vpop.f32.mrf.mxu0 }
 0x110   : > { %v476_v22 = vadd.f32 %v1581_v29, %v475_v20 }
 0x112   : > { %v533_v23 = vmax.f32 %v476_v22, 0.0 }
 0x114   : > { %627 = vmatmul.f32.vlgmr.msra.gmra.mxu2 %v533_v23  ;;  %v545_v23 = vmax.f32 %v506_v21, 0.0 }
 0x117   : > { %v478_v24 = vpop.f32.mrf.mxu0 }
 0x118   : > { %v479_v27 = vadd.f32 %v1581_v29, %v478_v24 }
 0x119   : > { %v583_v28 = vpop.f32.mrf.mxu1 }
 0x11a   : > { %v534_v30 = vmax.f32 %v479_v27, 0.0  ;;  %v681_v31 = vadd.f32 %v1610_v25, %v583_v28  ;;  %v546_v28 = vmax.f32 %v509_v26, 0.0 }
 0x11c   : > { %714 = vst.msk [vmem:[%s1614_s13] sm:$0xff] %vm713_vm1, %v681_v31  ;;  %630 = vmatmul.f32.gmra.mxu2 %v534_v30  ;;  %v511_v31 = vadd.f32 %v1581_v29, %v510_v59 }
 0x11e   : > { %v547_v33 = vmax.f32 %v511_v31, 0.0 }
 0x11f   : > { %v480_v32 = vpop.f32.mrf.mxu0 }
 0x120   : > { %v481_v34 = vadd.f32 %v1581_v29, %v480_v32 }
 0x121   : > { %v586_v35 = vpop.f32.mrf.mxu1 }
 0x122   : > { %v535_v36 = vmax.f32 %v481_v34, 0.0  ;;  %v682_v37 = vadd.f32 %v1610_v25, %v586_v35 }
 0x124   : > { %715 = vst.msk [vmem:[%s1614_s13 + $0x8] sm:$0xff] %vm713_vm1, %v682_v37  ;;  %633 = vmatmul.f32.gmra.mxu2 %v535_v36 }
 0x129   : > { %v589_v40 = vpop.f32.mrf.mxu1 }
 0x12a   : > { %v683_v42 = vadd.f32 %v1610_v25, %v589_v40 }
 0x12c   : > { %716 = vst.msk [vmem:[%s1614_s13 + $0x10] sm:$0xff] %vm713_vm1, %v683_v42  ;;  %636 = vmatmul.f32.gmra.mxu2 %v536_v41 }
 0x131   : > { %v592_v45 = vpop.f32.mrf.mxu1 }
 0x132   : > { %v684_v47 = vadd.f32 %v1610_v25, %v592_v45 }
 0x134   : > { %717 = vst.msk [vmem:[%s1614_s13 + $0x18] sm:$0xff] %vm713_vm1, %v684_v47  ;;  %639 = vmatmul.f32.gmra.mxu2 %v537_v46 }
 0x139   : > { %v595_v50 = vpop.f32.mrf.mxu1 }
 0x13a   : > { %v685_v52 = vadd.f32 %v1610_v25, %v595_v50 }
 0x13c   : > { %718 = vst.msk [vmem:[%s1614_s13 + $0x20] sm:$0xff] %vm713_vm1, %v685_v52  ;;  %642 = vmatmul.f32.gmra.mxu2 %v538_v51 }
 0x141   : > { %v598_v55 = vpop.f32.mrf.mxu1 }
 0x142   : > { %v686_v57 = vadd.f32 %v1610_v25, %v598_v55 }
 0x144   : > { %719 = vst.msk [vmem:[%s1614_s13 + $0x28] sm:$0xff] %vm713_vm1, %v686_v57  ;;  %645 = vmatmul.f32.gmra.mxu2 %v539_v56 }
 0x149   : > { %v601_v60 = vpop.f32.mrf.mxu1 }
 0x14a   : > { %v687_v62 = vadd.f32 %v1610_v25, %v601_v60 }
 0x14c   : > { %720 = vst.msk [vmem:[%s1614_s13 + $0x30] sm:$0xff] %vm713_vm1, %v687_v62  ;;  %648 = vmatmul.f32.gmra.mxu2 %v540_v61 }
 0x151   : > { %v604_v2 = vpop.f32.mrf.mxu1 }
 0x152   : > { %v688_v4 = vadd.f32 %v1610_v25, %v604_v2 }
 0x154   : > { %721 = vst.msk [vmem:[%s1614_s13 + $0x38] sm:$0xff] %vm713_vm1, %v688_v4  ;;  %651 = vmatmul.f32.gmra.mxu2 %v541_v3 }
 0x159   : > { %v607_v9 = vpop.f32.mrf.mxu1 }
 0x15a   : > { %v689_v11 = vadd.f32 %v1610_v25, %v607_v9 }
 0x15c   : > { %722 = vst.msk [vmem:[%s1614_s13 + $0x40] sm:$0xff] %vm713_vm1, %v689_v11  ;;  %654 = vmatmul.f32.gmra.mxu2 %v542_v10 }
 0x161   : > { %v610_v14 = vpop.f32.mrf.mxu1 }
 0x162   : > { %v690_v16 = vadd.f32 %v1610_v25, %v610_v14 }
 0x164   : > { %723 = vst.msk [vmem:[%s1614_s13 + $0x48] sm:$0xff] %vm713_vm1, %v690_v16  ;;  %657 = vmatmul.f32.gmra.mxu2 %v543_v15 }
 0x169   : > { %v613_v18 = vpop.f32.mrf.mxu1 }
 0x16a   : > { %v691_v20 = vadd.f32 %v1610_v25, %v613_v18 }
 0x16c   : > { %724 = vst.msk [vmem:[%s1614_s13 + $0x50] sm:$0xff] %vm713_vm1, %v691_v20  ;;  %660 = vmatmul.f32.gmra.mxu2 %v544_v19 }
 0x171   : > { %v616_v22 = vpop.f32.mrf.mxu1 }
 0x172   : > { %v692_v24 = vadd.f32 %v1610_v25, %v616_v22 }
 0x174   : > { %725 = vst.msk [vmem:[%s1614_s13 + $0x58] sm:$0xff] %vm713_vm1, %v692_v24  ;;  %663 = vmatmul.f32.gmra.mxu2 %v545_v23 }
 0x179   : > { %v619_v27 = vpop.f32.mrf.mxu1 }
 0x17a   : > { %v693_v30 = vadd.f32 %v1610_v25, %v619_v27 }
 0x17c   : > { %726 = vst.msk [vmem:[%s1614_s13 + $0x60] sm:$0xff] %vm713_vm1, %v693_v30  ;;  %666 = vmatmul.f32.gmra.mxu2 %v546_v28 }
 0x181   : > { %v622_v32 = vpop.f32.mrf.mxu1 }
 0x182   : > { %v694_v34 = vadd.f32 %v1610_v25, %v622_v32 }
 0x184   : > { %727 = vst.msk [vmem:[%s1614_s13 + $0x68] sm:$0xff] %vm713_vm1, %v694_v34  ;;  %669 = vmatmul.f32.gmra.mxu2 %v547_v33 }
 0x187   : > { %v673_v53 = vpop.f32.mrf.mxu3 }
 0x188   : > { %v711_v55 = vadd.f32 %v1610_v25, %v673_v53 }
 0x189   : > { %v625_v35 = vpop.f32.mrf.mxu1 }
 0x18a   : > { %v695_v36 = vadd.f32 %v1610_v25, %v625_v35  ;;  %744 = vst.msk [vmem:[%s1614_s13 + $0xf0] sm:$0xff] %vm713_vm1, %v711_v55 }
 0x18c   : > { %728 = vst.msk [vmem:[%s1614_s13 + $0x70] sm:$0xff] %vm713_vm1, %v695_v36 }
 0x18f   : > { %v676_v57 = vpop.f32.mrf.mxu3 }
 0x190   : > { %v712_v59 = vadd.f32 %v1610_v25, %v676_v57 }
 0x192   : > { %745 = vst.msk [vmem:[%s1614_s13 + $0xf8] sm:$0xff] %vm713_vm1, %v712_v59 }
 0x197   : > { %v628_v37 = vpop.f32.mrf.mxu2 }
 0x198   : > { %v696_v38 = vadd.f32 %v1610_v25, %v628_v37 }
 0x19a   : > { %729 = vst.msk [vmem:[%s1614_s13 + $0x78] sm:$0xff] %vm713_vm1, %v696_v38 }
 0x19f   : > { %v631_v29 = vpop.f32.mrf.mxu2 }
 0x1a0   : > { %v697_v39 = vadd.f32 %v1610_v25, %v631_v29 }
 0x1a2   : > { %730 = vst.msk [vmem:[%s1614_s13 + $0x80] sm:$0xff] %vm713_vm1, %v697_v39 }
 0x1a7   : > { %v634_v40 = vpop.f32.mrf.mxu2 }
 0x1a8   : > { %v698_v41 = vadd.f32 %v1610_v25, %v634_v40 }
 0x1aa   : > { %731 = vst.msk [vmem:[%s1614_s13 + $0x88] sm:$0xff] %vm713_vm1, %v698_v41 }
 0x1af   : > { %v637_v42 = vpop.f32.mrf.mxu2 }
 0x1b0   : > { %v699_v43 = vadd.f32 %v1610_v25, %v637_v42 }
 0x1b2   : > { %732 = vst.msk [vmem:[%s1614_s13 + $0x90] sm:$0xff] %vm713_vm1, %v699_v43 }
 0x1b7   : > { %v640_v44 = vpop.f32.mrf.mxu2 }
 0x1b8   : > { %v700_v45 = vadd.f32 %v1610_v25, %v640_v44 }
 0x1ba   : > { %733 = vst.msk [vmem:[%s1614_s13 + $0x98] sm:$0xff] %vm713_vm1, %v700_v45 }
 0x1bf   : > { %v643_v46 = vpop.f32.mrf.mxu2 }
 0x1c0   : > { %v701_v47 = vadd.f32 %v1610_v25, %v643_v46 }
 0x1c2   : > { %734 = vst.msk [vmem:[%s1614_s13 + $0xa0] sm:$0xff] %vm713_vm1, %v701_v47 }
 0x1c7   : > { %v646_v48 = vpop.f32.mrf.mxu2 }
 0x1c8   : > { %v702_v49 = vadd.f32 %v1610_v25, %v646_v48 }
 0x1ca   : > { %735 = vst.msk [vmem:[%s1614_s13 + $0xa8] sm:$0xff] %vm713_vm1, %v702_v49 }
 0x1cf   : > { %v649_v50 = vpop.f32.mrf.mxu2 }
 0x1d0   : > { %v703_v51 = vadd.f32 %v1610_v25, %v649_v50 }
 0x1d2   : > { %736 = vst.msk [vmem:[%s1614_s13 + $0xb0] sm:$0xff] %vm713_vm1, %v703_v51 }
 0x1d7   : > { %v652_v52 = vpop.f32.mrf.mxu2 }
 0x1d8   : > { %v704_v54 = vadd.f32 %v1610_v25, %v652_v52 }
 0x1da   : > { %737 = vst.msk [vmem:[%s1614_s13 + $0xb8] sm:$0xff] %vm713_vm1, %v704_v54 }
 0x1df   : > { %v655_v56 = vpop.f32.mrf.mxu2 }
 0x1e0   : > { %v705_v58 = vadd.f32 %v1610_v25, %v655_v56 }
 0x1e2   : > { %738 = vst.msk [vmem:[%s1614_s13 + $0xc0] sm:$0xff] %vm713_vm1, %v705_v58 }
 0x1e7   : > { %v658_v60 = vpop.f32.mrf.mxu2 }
 0x1e8   : > { %v706_v61 = vadd.f32 %v1610_v25, %v658_v60 }
 0x1ea   : > { %739 = vst.msk [vmem:[%s1614_s13 + $0xc8] sm:$0xff] %vm713_vm1, %v706_v61 }
 0x1ef   : > { %v661_v62 = vpop.f32.mrf.mxu2 }
 0x1f0   : > { %v707_v63 = vadd.f32 %v1610_v25, %v661_v62 }
 0x1f2   : > { %740 = vst.msk [vmem:[%s1614_s13 + $0xd0] sm:$0xff] %vm713_vm1, %v707_v63 }
 0x1f7   : > { %v664_v0 = vpop.f32.mrf.mxu2 }
 0x1f8   : > { %v708_v1 = vadd.f32 %v1610_v25, %v664_v0 }
 0x1fa   : > { %741 = vst.msk [vmem:[%s1614_s13 + $0xd8] sm:$0xff] %vm713_vm1, %v708_v1 }
 0x1ff   : > { %v667_v2 = vpop.f32.mrf.mxu2 }
 0x200   : > { %v709_v3 = vadd.f32 %v1610_v25, %v667_v2 }
 0x202   : > { %742 = vst.msk [vmem:[%s1614_s13 + $0xe0] sm:$0xff] %vm713_vm1, %v709_v3 }
 0x206   : > { %752 = sbr.rel (!%p1488_p4) target bundleno = 587 (0x24b), region = 44 }
 0x207   : > { %v670_v4 = vpop.f32.mrf.mxu2 }
 0x208   : > { %v710_v5 = vadd.f32 %v1610_v25, %v670_v4 }
 0x20a   : > { %743 = vst.msk [vmem:[%s1614_s13 + $0xe8] sm:$0xff] %vm713_vm1, %v710_v5 }
 0x20b   : > { %s1884_s20 = smov (!%p755_p8, %s754_s20), 32 }
 0x20c   : > { %s1183_s18 = sshll.u32 %s1884_s20, 3 }
 0x20d   : > { %p1186_p9 = scmp.eq.s32.totalorder %s1183_s18, 0 }
 0x20e   : > { %s1739_s19 = sshrl.u32 (!%p1186_p9), %s1884_s20, 5 }
 0x20f   : > { %763 = sbr.rel (%p1186_p9) target bundleno = 587 (0x24b), region = 48  ;;  %p1187_p10 = scmp.le.s32.totalorder (!%p1186_p9), %s1739_s19, 0 }
 0x214   : > { %1042 = sbr.rel (%p1187_p10) target bundleno = 570 (0x23a), region = 124  ;;  %s1875_s4 = smov (!%p1187_p10), %s1733_s17 }
 0x215   : > { %s1876_s27 = smov (!%p1187_p10), %s1614_s13  ;;  %s1748_s30 = smov (!%p1187_p10), 0  }
 0x216   : > { %s1750_s22 = smov (!%p1187_p10), 0  }
 0x219 LB: >> { %v888_v25 = vld [vmem:[%s1404_s27] sm:$0xff]  ;;  %v890_v6 = vld [vmem:[%s1404_s27 + $0x8] sm:$0xff]  ;;  %v892_v7 = vld [vmem:[%s1404_s27 + $0x10] sm:$0xff]  ;;  %s952_s24 = sadd.s32 1, %s1408_s30  ;;  %s882_s22 = sadd.s32 1, %s1412_s22   ;;  %s1412_s22 = sphi %s1750_s22, %s882_s22   ;;  %s1408_s30 = sphi %s1748_s30, %s1879_s30   ;;  %s1404_s27 = sphi %s1876_s27, %s1878_s27   ;;  %s1400_s4 = sphi %s1875_s4, %s1877_s4  }
 0x21a   : >> { %889 = vst [vmem:[%s1400_s4] sm:$0xff] %v888_v25  ;;  %v894_v8 = vld [vmem:[%s1404_s27 + $0x18] sm:$0xff]  ;;  %p953_p11 = scmp.ge.s32.totalorder %s952_s24, %s1739_s19  ;;  %v896_v9 = vld [vmem:[%s1404_s27 + $0x20] sm:$0xff]  ;;  %v898_v10 = vld [vmem:[%s1404_s27 + $0x28] sm:$0xff]  ;;  %p881_p12 = scmp.ge.s32.totalorder %s882_s22, %s1739_s19 }
 0x21b   : >> { %891 = vst [vmem:[%s1400_s4 + $0x8] sm:$0xff] %v890_v6  ;;  %v900_v11 = vld [vmem:[%s1404_s27 + $0x30] sm:$0xff]  ;;  %v902_v12 = vld [vmem:[%s1404_s27 + $0x38] sm:$0xff]  ;;  %v904_v13 = vld [vmem:[%s1404_s27 + $0x40] sm:$0xff] }
 0x21c   : >> { %893 = vst [vmem:[%s1400_s4 + $0x10] sm:$0xff] %v892_v7  ;;  %s1886_s24 = smov (%p953_p11, %s952_s24), 0  ;;  %v906_v14 = vld [vmem:[%s1404_s27 + $0x48] sm:$0xff]  ;;  %v908_v15 = vld [vmem:[%s1404_s27 + $0x50] sm:$0xff]  ;;  %v910_v16 = vld [vmem:[%s1404_s27 + $0x58] sm:$0xff] }
 0x21d   : >> { %895 = vst [vmem:[%s1400_s4 + $0x18] sm:$0xff] %v894_v8  ;;  %s1188_s25 = sshll.u32 %s1886_s24, 8  ;;  %v912_v17 = vld [vmem:[%s1404_s27 + $0x60] sm:$0xff]  ;;  %v914_v18 = vld [vmem:[%s1404_s27 + $0x68] sm:$0xff]  ;;  %v916_v19 = vld [vmem:[%s1404_s27 + $0x70] sm:$0xff]  ;;  %s1879_s30 = smov %s1886_s24 }
 0x21e   : >> { %897 = vst [vmem:[%s1400_s4 + $0x20] sm:$0xff] %v896_v9  ;;  %s1782_s28 = scalar_lea.vmem %s1614_s13, %s1188_s25 [#allocation3]   ;;  %s1785_s29 = scalar_lea.vmem %s1733_s17, %s1188_s25   ;;  %v918_v20 = vld [vmem:[%s1404_s27 + $0x78] sm:$0xff]  ;;  %v920_v21 = vld [vmem:[%s1404_s27 + $0x80] sm:$0xff]  ;;  %v922_v22 = vld [vmem:[%s1404_s27 + $0x88] sm:$0xff] }
 0x21f   : >> { %899 = vst [vmem:[%s1400_s4 + $0x28] sm:$0xff] %v898_v10  ;;  %v924_v23 = vld [vmem:[%s1404_s27 + $0x90] sm:$0xff]  ;;  %v926_v24 = vld [vmem:[%s1404_s27 + $0x98] sm:$0xff]  ;;  %v928_v26 = vld [vmem:[%s1404_s27 + $0xa0] sm:$0xff] }
 0x220   : >> { %901 = vst [vmem:[%s1400_s4 + $0x30] sm:$0xff] %v900_v11  ;;  %v930_v27 = vld [vmem:[%s1404_s27 + $0xa8] sm:$0xff]  ;;  %v932_v28 = vld [vmem:[%s1404_s27 + $0xb0] sm:$0xff]  ;;  %v934_v30 = vld [vmem:[%s1404_s27 + $0xb8] sm:$0xff] }
 0x221   : >> { %903 = vst [vmem:[%s1400_s4 + $0x38] sm:$0xff] %v902_v12  ;;  %v936_v31 = vld [vmem:[%s1404_s27 + $0xc0] sm:$0xff]  ;;  %v938_v32 = vld [vmem:[%s1404_s27 + $0xc8] sm:$0xff]  ;;  %v940_v33 = vld [vmem:[%s1404_s27 + $0xd0] sm:$0xff] }
 0x222   : >> { %905 = vst [vmem:[%s1400_s4 + $0x40] sm:$0xff] %v904_v13  ;;  %v942_v34 = vld [vmem:[%s1404_s27 + $0xd8] sm:$0xff]  ;;  %v944_v35 = vld [vmem:[%s1404_s27 + $0xe0] sm:$0xff]  ;;  %v946_v36 = vld [vmem:[%s1404_s27 + $0xe8] sm:$0xff] }
 0x223   : >> { %907 = vst [vmem:[%s1400_s4 + $0x48] sm:$0xff] %v906_v14  ;;  %v948_v37 = vld [vmem:[%s1404_s27 + $0xf0] sm:$0xff]  ;;  %v950_v38 = vld [vmem:[%s1404_s27 + $0xf8] sm:$0xff]  ;;  %s1878_s27 = smov %s1782_s28 }
 0x224   : >> { %909 = vst [vmem:[%s1400_s4 + $0x50] sm:$0xff] %v908_v15 }
 0x225   : >> { %911 = vst [vmem:[%s1400_s4 + $0x58] sm:$0xff] %v910_v16 }
 0x226   : >> { %913 = vst [vmem:[%s1400_s4 + $0x60] sm:$0xff] %v912_v17 }
 0x227   : >> { %915 = vst [vmem:[%s1400_s4 + $0x68] sm:$0xff] %v914_v18 }
 0x228   : >> { %917 = vst [vmem:[%s1400_s4 + $0x70] sm:$0xff] %v916_v19 }
 0x229   : >> { %919 = vst [vmem:[%s1400_s4 + $0x78] sm:$0xff] %v918_v20 }
 0x22a   : >> { %921 = vst [vmem:[%s1400_s4 + $0x80] sm:$0xff] %v920_v21 }
 0x22b   : >> { %923 = vst [vmem:[%s1400_s4 + $0x88] sm:$0xff] %v922_v22 }
 0x22c   : >> { %925 = vst [vmem:[%s1400_s4 + $0x90] sm:$0xff] %v924_v23 }
 0x22d   : >> { %927 = vst [vmem:[%s1400_s4 + $0x98] sm:$0xff] %v926_v24 }
 0x22e   : >> { %929 = vst [vmem:[%s1400_s4 + $0xa0] sm:$0xff] %v928_v26 }
 0x22f   : >> { %931 = vst [vmem:[%s1400_s4 + $0xa8] sm:$0xff] %v930_v27 }
 0x230   : >> { %933 = vst [vmem:[%s1400_s4 + $0xb0] sm:$0xff] %v932_v28 }
 0x231   : >> { %935 = vst [vmem:[%s1400_s4 + $0xb8] sm:$0xff] %v934_v30 }
 0x232   : >> { %937 = vst [vmem:[%s1400_s4 + $0xc0] sm:$0xff] %v936_v31 }
 0x233   : >> { %939 = vst [vmem:[%s1400_s4 + $0xc8] sm:$0xff] %v938_v32 }
 0x234   : >> { %941 = vst [vmem:[%s1400_s4 + $0xd0] sm:$0xff] %v940_v33 }
 0x235   : >> { %943 = vst [vmem:[%s1400_s4 + $0xd8] sm:$0xff] %v942_v34  ;;  %884 = sbr.rel (!%p881_p12) target bundleno = 537 (0x219), region = 130 }
 0x236   : >> { %945 = vst [vmem:[%s1400_s4 + $0xe0] sm:$0xff] %v944_v35 }
 0x237   : >> { %947 = vst [vmem:[%s1400_s4 + $0xe8] sm:$0xff] %v946_v36 }
 0x238   : >> { %949 = vst [vmem:[%s1400_s4 + $0xf0] sm:$0xff] %v948_v37 }
 0x239   : >> { %951 = vst [vmem:[%s1400_s4 + $0xf8] sm:$0xff] %v950_v38  ;;  %s1877_s4 = smov %s1785_s29 }
 0x23a PF: > { %s1850_s6 = sand.u32 31, %s1884_s20   ;;  %s1217_s7 = sshll.u32 %s1739_s19, 8 }
 0x23b   : > { %s963_s8 = scalar_lea.vmem %s1614_s13, %s1217_s7 [#allocation3]   ;;  %s965_s9 = scalar_lea.vmem %s1733_s17, %s1217_s7  }
 0x23c   : > { %p1193_p13 = scmp.le.s32.totalorder %s1850_s6, 0 }
 0x23d   : > { %s1414_s12 = smov (!%p1193_p13), %s965_s9   ;;  %s1418_s10 = smov (!%p1193_p13), %s963_s8  }
 0x23e   : > { %1056 = sbr.rel (%p1193_p13) target bundleno = 587 (0x24b), region = 135  ;;  %s1422_s11 = smov (!%p1193_p13), 0  }
 0x23f   : > { %s1426_s14 = smov (!%p1193_p13), 0  }
 0x243 LB: >> { %v975_v29 = vld [vmem:[%s1420_s10] sm:$0xff]  ;;  %s977_s20 = sadd.s32 1, %s1424_s11  ;;  %s969_s14 = sadd.s32 1, %s1428_s14   ;;  %s1428_s14 = sphi %s1426_s14, %s969_s14   ;;  %s1424_s11 = sphi %s1422_s11, %s1423_s11   ;;  %s1420_s10 = sphi %s1418_s10, %s982_s10   ;;  %s1416_s12 = sphi %s1414_s12, %s983_s12  }
 0x244   : >> { %976 = vst [vmem:[%s1416_s12] sm:$0xff] %v975_v29  ;;  %p978_p0 = scmp.ge.s32.totalorder %s977_s20, %s1850_s6  ;;  %p968_p1 = scmp.ge.s32.totalorder %s969_s14, %s1850_s6 }
 0x246   : >> { %s1888_s20 = smov (%p978_p0, %s977_s20), 0  ;;  %971 = sbr.rel (!%p968_p1) target bundleno = 579 (0x243), region = 141 }
 0x247   : >> { %s1194_s13 = sshll.u32 %s1888_s20, 3  ;;  %s1423_s11 = smov %s1888_s20  }
 0x248   : >> { %s982_s10 = scalar_lea.vmem %s963_s8, %s1194_s13 [#allocation3]   ;;  %s983_s12 = scalar_lea.vmem %s965_s9, %s1194_s13  }
 0x24b PF: > { %p13_p2 = scmp.ge.s32.totalorder %s1478_s23, 6   ;;  %s1880_s20 = smov %s1392_s21 }
 0x24c   : > { %s1881_s21 = smov %s1486_s26  ;;  %s1882_s22 = smov %s1478_s23 }
 0x24d   :  { %15 = sbr.rel (!%p13_p2) target bundleno = 4 (0x4), region = 152 }

</bundles_post_ra>
